<compile_context>
chip_gen: v5e
topology: v5e:2x2
jax: 0.10.0
libtpu: 0.0.40
codegen_flags: <defaults>
</compile_context>

<pallas_src>
import functools

import jax
import jax.numpy as jnp
import numpy as np
from jax import lax
from jax.experimental import pallas as pl
from jax.experimental.pallas import tpu as pltpu


_LN_EPS = 1e-5

# Leading-batch dot_general dimension numbers over the head axis H:
_SCORES_DN = (((2,), (1,)), ((0,), (0,)))   # (H, T, D) x (H, D, S) -> (H, T, S)
_CTX_DN    = (((2,), (2,)), ((0,), (0,)))   # (H, D, S) x (H, T, S) -> (H, D, T)


def _normalize(x, eps=_LN_EPS):
    """LayerNorm without the affine part (gamma/beta folded into the next matmul)."""
    mu = jnp.mean(x, axis=-1, keepdims=True)
    var = jnp.mean(jnp.square(x - mu), axis=-1, keepdims=True)
    return (x - mu) * lax.rsqrt(var + eps)


# ----------------------------- kernel ---------------------------------------

def encoder_layer_kernel(x_ref, wqkv_ref, bqkv_ref, wo_ref, bo_ref,
                         w1_ref, b1_ref, w2_ref, b2_ref, o_ref,
                         *, num_heads, compute_dtype):
    _, T, E = x_ref.shape
    H = num_heads
    D = E // H
    cd = compute_dtype
    exact_softmax = (cd == jnp.float32)

    x = x_ref[0]                             # (T, E) f32 for this batch element
    xn = _normalize(x)                       # LN0 (affine folded into wqkv/bqkv)
    xT = xn.T.astype(cd)                     # (E, T) feature-major, cast once

    # ---- fused Q/K/V projection: one (3E, E) @ (E, T) matmul ----
    qkvT = jnp.dot(wqkv_ref[...], xT,
                   preferred_element_type=jnp.float32) + bqkv_ref[...]   # (3E, T) f32
    # Head split is a sublane-aligned reshape (D == 8 == sublane tile).
    qh = qkvT[0:E, :].reshape(H, D, T)        # (H, D, T)
    kh = qkvT[E:2 * E, :].reshape(H, D, T)
    vh = qkvT[2 * E:3 * E, :].reshape(H, D, T)

    # ---- attention core: leading-batch matmuls over heads ----
    q_htd = jnp.swapaxes(qh, 1, 2)            # (H, T, D)
    s = lax.dot_general(q_htd.astype(cd), kh.astype(cd), _SCORES_DN,
                        preferred_element_type=jnp.float32)              # (H, T, S)
    s = s - jnp.max(s, axis=-1, keepdims=True)
    p = jnp.exp(s)
    l = jnp.sum(p, axis=-1, keepdims=True)
    if exact_softmax:
        p = p / l
    else:
        p = p * pl.reciprocal(l, approx=True)
    ctxT = lax.dot_general(vh.astype(cd), p.astype(cd), _CTX_DN,
                           preferred_element_type=jnp.float32)           # (H, D, T)

    # ---- output projection: head-sum contracted on the MXU in one matmul ----
    ctx2 = ctxT.reshape(E, T)                 # sublane merge, layout-preserving
    attnT = jnp.dot(wo_ref[...], ctx2.astype(cd),
                    preferred_element_type=jnp.float32) + bo_ref[...]    # (E, T)

    # ---- residual + FFN in token-major orientation (lane-dense (T, 4E)) ----
    h = x + attnT.T                           # (T, E), stays in registers
    hn = _normalize(h)                        # LN1 (affine folded into w1/b1)
    a = jnp.dot(hn.astype(cd), w1_ref[...],
                preferred_element_type=jnp.float32) + b1_ref[...]        # (T, 4E)
    a = jnp.maximum(a, 0.0)
    f = jnp.dot(a.astype(cd), w2_ref[...],
                preferred_element_type=jnp.float32) + b2_ref[...]        # (T, E)

    o_ref[0] = h + f                          # single dense store per grid step


# ------------------------ parameter preparation ------------------------------

def prepare_params(torch_params, num_heads, compute_dtype):
    """Fold LayerNorm affines + q-scaling into the matmul weights, fuse Q/K/V weights
    into one operand, and lay weights out for the kernel's matmul orientations."""
    (in_w, in_b, out_w, out_b, fc1_w, fc1_b, fc2_w, fc2_b, g0, be0, g1, be1) = torch_params
    E = out_w.shape[0]
    D = E // num_heads
    scale = D ** (-0.5)

    def fold_proj(w, b, s):
        # y = (LN(x)*g0 + be0) @ w.T + b, applied in feature-major form: w_f @ LN(x).T
        w_f = (w * g0[None, :]) * s                   # (E_out, E_in)
        b_f = (b + w @ be0) * s                       # (E_out,)
        return w_f, b_f

    wq, bq = fold_proj(in_w[0:E], in_b[0:E], scale)
    wk, bk = fold_proj(in_w[E:2 * E], in_b[E:2 * E], 1.0)
    wv, bv = fold_proj(in_w[2 * E:3 * E], in_b[2 * E:3 * E], 1.0)
    wqkv = jnp.concatenate([wq, wk, wv], axis=0).astype(compute_dtype)    # (3E, E)
    bqkv = jnp.concatenate([bq, bk, bv], axis=0).reshape(3 * E, 1).astype(jnp.float32)

    wo = out_w.astype(compute_dtype)                                      # (E, E) out x in
    bo = out_b.reshape(E, 1).astype(jnp.float32)

    w1 = (g1[:, None] * fc1_w.T).astype(compute_dtype)                    # (E, 4E)
    b1 = (fc1_b + fc1_w @ be1).reshape(1, -1).astype(jnp.float32)
    w2 = fc2_w.T.astype(compute_dtype)                                    # (4E, E)
    b2 = fc2_b.reshape(1, -1).astype(jnp.float32)

    return (wqkv, bqkv, wo, bo, w1, b1, w2, b2)


# ----------------------------- wrapper ---------------------------------------

def multimodal_encoder_layer(x_tbe, torch_params, num_heads,
                             compute_dtype=jnp.bfloat16):
    """x_tbe: (T, B, E) float32 (PyTorch layout).  Returns (T, B, E) float32."""
    T, B, E = x_tbe.shape
    params = prepare_params(torch_params, num_heads, compute_dtype)
    kernel = functools.partial(encoder_layer_kernel,
                               num_heads=num_heads, compute_dtype=compute_dtype)

    # One-time layout change so every grid step sees a contiguous (T, E) row block.
    x_bte = jnp.transpose(x_tbe.astype(jnp.float32), (1, 0, 2))           # (B, T, E)

    def const_spec(shape):
        return pl.BlockSpec(shape, lambda b, _s=shape: (0,) * len(_s))

    grid_spec = pltpu.PrefetchScalarGridSpec(
        num_scalar_prefetch=0,
        grid=(B,),
        in_specs=[
            pl.BlockSpec((1, T, E), lambda b: (b, 0, 0)),                 # x
            const_spec(params[0].shape),   # wqkv (3E, E)
            const_spec(params[1].shape),   # bqkv (3E, 1)
            const_spec(params[2].shape),   # wo   (E, E)
            const_spec(params[3].shape),   # bo   (E, 1)
            const_spec(params[4].shape),   # w1   (E, 4E)
            const_spec(params[5].shape),   # b1   (1, 4E)
            const_spec(params[6].shape),   # w2   (4E, E)
            const_spec(params[7].shape),   # b2   (1, E)
        ],
        out_specs=pl.BlockSpec((1, T, E), lambda b: (b, 0, 0)),
    )

    out_bte = pl.pallas_call(
        kernel,
        out_shape=jax.ShapeDtypeStruct((B, T, E), jnp.float32),
        grid_spec=grid_spec,
        compiler_params=pltpu.CompilerParams(
            dimension_semantics=("parallel",),      # batch steps shard across TCs (v7x)
            vmem_limit_bytes=32 * 1024 * 1024),     # safe on v5e/v6e/v7x at these sizes
    )(x_bte, *params)

    return jnp.transpose(out_bte, (1, 0, 2))        # back to (T, B, E)


# ----------------------- deterministic parameter init ------------------------

def xavier_uniform(key, out_features, in_features):
    bound = np.sqrt(6.0 / (in_features + out_features))
    return jax.random.uniform(key, (out_features, in_features),
                              minval=-bound, maxval=bound, dtype=jnp.float32)


def init_torch_params(key, embed_dim):
    """Parameters in PyTorch layouts.  Biases / LayerNorm affines get small random values
    (instead of zeros/ones) so the weight-folding path is actually exercised."""
    E = embed_dim
    ks = jax.random.split(key, 10)
    in_w = xavier_uniform(ks[0], 3 * E, E)
    in_b = 0.1 * jax.random.normal(ks[1], (3 * E,), jnp.float32)
    out_w = xavier_uniform(ks[2], E, E)
    out_b = 0.1 * jax.random.normal(ks[3], (E,), jnp.float32)
    fc1_w = xavier_uniform(ks[4], 4 * E, E)
    fc1_b = 0.1 * jax.random.normal(ks[5], (4 * E,), jnp.float32)
    fc2_w = xavier_uniform(ks[6], E, 4 * E)
    fc2_b = 0.1 * jax.random.normal(ks[7], (E,), jnp.float32)
    g0 = 1.0 + 0.1 * jax.random.normal(ks[8], (E,), jnp.float32)
    be0 = 0.1 * jax.random.normal(ks[9], (E,), jnp.float32)
    g1 = jnp.full((E,), 0.9, jnp.float32)
    be1 = jnp.full((E,), 0.05, jnp.float32)
    return (in_w, in_b, out_w, out_b, fc1_w, fc1_b, fc2_w, fc2_b, g0, be0, g1, be1)


# ----------------------------- pure-JAX reference -----------------------------

def reference(x_tbe, torch_params, num_heads):
    (in_w, in_b, out_w, out_b, fc1_w, fc1_b, fc2_w, fc2_b, g0, be0, g1, be1) = torch_params
    T, B, E = x_tbe.shape
    D = E // num_heads

    def ln(x, g, b):
        mu = jnp.mean(x, axis=-1, keepdims=True)
        var = jnp.mean((x - mu) ** 2, axis=-1, keepdims=True)
        return (x - mu) / jnp.sqrt(var + _LN_EPS) * g + b

    with jax.default_matmul_precision("highest"):
        x = x_tbe
        residual = x
        xn = ln(x, g0, be0)
        qkv = xn @ in_w.T + in_b                          # (T, B, 3E)
        q, k, v = jnp.split(qkv, 3, axis=-1)
        q = q * D ** (-0.5)

        def heads(t):                                     # (T, B, E) -> (B*H, T, D)
            return t.reshape(T, B * num_heads, D).transpose(1, 0, 2)

        qh, kh, vh = heads(q), heads(k), heads(v)
        s = jnp.einsum("btd,bsd->bts", qh, kh)
        p = jax.nn.softmax(s, axis=-1)
        ctx = jnp.einsum("bts,bsd->btd", p, vh)           # (B*H, T, D)
        attn = ctx.transpose(1, 0, 2).reshape(T, B, E)
        attn = attn @ out_w.T + out_b
        x = residual + attn

        residual = x
        xn = ln(x, g1, be1)
        h1 = jnp.maximum(xn @ fc1_w.T + fc1_b, 0.0)
        return residual + (h1 @ fc2_w.T + fc2_b)


# ----------------------------- main -------------------------------------------

if __name__ == "__main__":
    T, B, E, H = 8, 2, 32, 4          # seq=8, batch=2, embed_dim=32, num_heads=4
    key = jax.random.PRNGKey(0)
    kx, kp = jax.random.split(key)
    x = jax.random.normal(kx, (T, B, E), dtype=jnp.float32)   # PyTorch layout (T, B, E)
    torch_params = init_torch_params(kp, E)

    ref = jax.block_until_ready(reference(x, torch_params, H))

    # f32 matmul path with exact softmax normalization.
    out_f32 = jax.block_until_ready(
        multimodal_encoder_layer(x, torch_params, H, compute_dtype=jnp.float32))
    assert out_f32.shape == (T, B, E)
    np.testing.assert_allclose(np.asarray(out_f32), np.asarray(ref), rtol=5e-3, atol=5e-3)

    # bf16 matmul operands (default; v6e/v7x MXU path); accumulation/LN/softmax stay f32.
    out_bf16 = jax.block_until_ready(
        multimodal_encoder_layer(x, torch_params, H))
    np.testing.assert_allclose(np.asarray(out_bf16), np.asarray(ref), rtol=5e-2, atol=5e-2)

    print("KERNEL_OK")
</pallas_src>

<mosaic_0001>
module attributes {stable_mosaic.version = 11 : i64} {
  func.func @encoder_layer_kernel(%arg0: i32, %arg1: memref<1x8x32xf32, #tpu.memory_space<vmem>>, %arg2: memref<96x32xf32, #tpu.memory_space<vmem>>, %arg3: memref<96x1xf32, #tpu.memory_space<vmem>>, %arg4: memref<32x32xf32, #tpu.memory_space<vmem>>, %arg5: memref<32x1xf32, #tpu.memory_space<vmem>>, %arg6: memref<32x128xf32, #tpu.memory_space<vmem>>, %arg7: memref<1x128xf32, #tpu.memory_space<vmem>>, %arg8: memref<128x32xf32, #tpu.memory_space<vmem>>, %arg9: memref<1x32xf32, #tpu.memory_space<vmem>>, %arg10: memref<1x8x32xf32, #tpu.memory_space<vmem>>) attributes {dimension_semantics = [#tpu.dimension_semantics<parallel>], iteration_bounds = array<i64: 2>, scalar_prefetch = 0 : i64, scratch_operands = 0 : i64, tpu.core_type = #tpu.core_type<tc>, window_params = [{transform_indices = @transform_0, window_bounds = array<i64: 1, 8, 32>}, {pipeline_mode = #tpu.pipeline_mode<synchronous>, transform_indices = @transform_1, window_bounds = array<i64: 96, 32>}, {pipeline_mode = #tpu.pipeline_mode<synchronous>, transform_indices = @transform_2, window_bounds = array<i64: 96, 1>}, {pipeline_mode = #tpu.pipeline_mode<synchronous>, transform_indices = @transform_3, window_bounds = array<i64: 32, 32>}, {pipeline_mode = #tpu.pipeline_mode<synchronous>, transform_indices = @transform_4, window_bounds = array<i64: 32, 1>}, {pipeline_mode = #tpu.pipeline_mode<synchronous>, transform_indices = @transform_5, window_bounds = array<i64: 32, 128>}, {pipeline_mode = #tpu.pipeline_mode<synchronous>, transform_indices = @transform_6, window_bounds = array<i64: 1, 128>}, {pipeline_mode = #tpu.pipeline_mode<synchronous>, transform_indices = @transform_7, window_bounds = array<i64: 128, 32>}, {pipeline_mode = #tpu.pipeline_mode<synchronous>, transform_indices = @transform_8, window_bounds = array<i64: 1, 32>}, {transform_indices = @transform_9, window_bounds = array<i64: 1, 8, 32>}]} {
    %c0 = arith.constant 0 : index
    %c0_0 = arith.constant 0 : index
    %c0_1 = arith.constant 0 : index
    %0 = vector.load %arg1[%c0, %c0_0, %c0_1] : memref<1x8x32xf32, #tpu.memory_space<vmem>>, vector<1x8x32xf32>
    %1 = vector.shape_cast %0 : vector<1x8x32xf32> to vector<8x32xf32>
    %cst = arith.constant dense<0.000000e+00> : vector<8xf32>
    %2 = vector.multi_reduction <add>, %1, %cst [1] : vector<8x32xf32> to vector<8xf32>
    %3 = vector.shape_cast %2 : vector<8xf32> to vector<8x1xf32>
    %cst_2 = arith.constant 3.200000e+01 : f32
    %4 = vector.broadcast %cst_2 : f32 to vector<8x1xf32>
    %5 = arith.divf %3, %4 : vector<8x1xf32>
    %6 = vector.broadcast %5 : vector<8x1xf32> to vector<8x32xf32>
    %7 = arith.subf %1, %6 : vector<8x32xf32>
    %8 = arith.mulf %7, %7 : vector<8x32xf32>
    %cst_3 = arith.constant dense<0.000000e+00> : vector<8xf32>
    %9 = vector.multi_reduction <add>, %8, %cst_3 [1] : vector<8x32xf32> to vector<8xf32>
    %10 = vector.shape_cast %9 : vector<8xf32> to vector<8x1xf32>
    %cst_4 = arith.constant 3.200000e+01 : f32
    %11 = vector.broadcast %cst_4 : f32 to vector<8x1xf32>
    %12 = arith.divf %10, %11 : vector<8x1xf32>
    %13 = vector.broadcast %5 : vector<8x1xf32> to vector<8x32xf32>
    %14 = arith.subf %1, %13 : vector<8x32xf32>
    %cst_5 = arith.constant 9.99999974E-6 : f32
    %15 = vector.broadcast %cst_5 : f32 to vector<8x1xf32>
    %16 = arith.addf %12, %15 : vector<8x1xf32>
    %17 = math.rsqrt %16 : vector<8x1xf32>
    %18 = vector.broadcast %17 : vector<8x1xf32> to vector<8x32xf32>
    %19 = arith.mulf %14, %18 : vector<8x32xf32>
    %20 = tpu.transpose %19, [1, 0] : vector<8x32xf32> -> vector<32x8xf32>
    %c0_6 = arith.constant 0 : index
    %c0_7 = arith.constant 0 : index
    %21 = vector.load %arg2[%c0_6, %c0_7] : memref<96x32xf32, #tpu.memory_space<vmem>>, vector<96x32xf32>
    %cst_8 = arith.constant dense<0.000000e+00> : vector<96x8xf32>
    %22 = tpu.matmul %21, %20, %cst_8 {dimension_numbers = #tpu.dot_dimension_numbers<[1], [0], [0], [1], [0, 0, 1, 1], [], []>} : vector<96x32xf32>, vector<32x8xf32>, vector<96x8xf32> -> vector<96x8xf32>
    %c0_9 = arith.constant 0 : index
    %c0_10 = arith.constant 0 : index
    %23 = vector.load %arg3[%c0_9, %c0_10] : memref<96x1xf32, #tpu.memory_space<vmem>>, vector<96x1xf32>
    %24 = vector.broadcast %23 : vector<96x1xf32> to vector<96x8xf32>
    %25 = arith.addf %22, %24 : vector<96x8xf32>
    %26 = vector.extract_strided_slice %25 {offsets = [0, 0], sizes = [32, 8], strides = [1, 1]} : vector<96x8xf32> to vector<32x8xf32>
    %27 = vector.shape_cast %26 : vector<32x8xf32> to vector<4x8x8xf32>
    %28 = vector.extract_strided_slice %25 {offsets = [32, 0], sizes = [32, 8], strides = [1, 1]} : vector<96x8xf32> to vector<32x8xf32>
    %29 = vector.shape_cast %28 : vector<32x8xf32> to vector<4x8x8xf32>
    %30 = vector.extract_strided_slice %25 {offsets = [64, 0], sizes = [32, 8], strides = [1, 1]} : vector<96x8xf32> to vector<32x8xf32>
    %31 = vector.shape_cast %30 : vector<32x8xf32> to vector<4x8x8xf32>
    %32 = tpu.transpose %27, [0, 2, 1] : vector<4x8x8xf32> -> vector<4x8x8xf32>
    %cst_11 = arith.constant dense<0.000000e+00> : vector<4x8x8xf32>
    %33 = tpu.matmul %32, %29, %cst_11 {dimension_numbers = #tpu.dot_dimension_numbers<[2], [1], [1], [2], [0, 0, 0, 1, 1, 2], [0], [0]>} : vector<4x8x8xf32>, vector<4x8x8xf32>, vector<4x8x8xf32> -> vector<4x8x8xf32>
    %cst_12 = arith.constant dense<0xFF800000> : vector<4x8xf32>
    %34 = vector.multi_reduction <maximumf>, %33, %cst_12 [2] : vector<4x8x8xf32> to vector<4x8xf32>
    %35 = vector.shape_cast %34 : vector<4x8xf32> to vector<4x8x1xf32>
    %36 = vector.broadcast %35 : vector<4x8x1xf32> to vector<4x8x8xf32>
    %37 = arith.subf %33, %36 : vector<4x8x8xf32>
    %38 = math.exp %37 : vector<4x8x8xf32>
    %cst_13 = arith.constant dense<0.000000e+00> : vector<4x8xf32>
    %39 = vector.multi_reduction <add>, %38, %cst_13 [2] : vector<4x8x8xf32> to vector<4x8xf32>
    %40 = vector.shape_cast %39 : vector<4x8xf32> to vector<4x8x1xf32>
    %41 = vector.broadcast %40 : vector<4x8x1xf32> to vector<4x8x8xf32>
    %42 = arith.divf %38, %41 : vector<4x8x8xf32>
    %cst_14 = arith.constant dense<0.000000e+00> : vector<4x8x8xf32>
    %43 = tpu.matmul %31, %42, %cst_14 {dimension_numbers = #tpu.dot_dimension_numbers<[2], [2], [1], [1], [0, 0, 0, 1, 1, 1], [0], [0]>} : vector<4x8x8xf32>, vector<4x8x8xf32>, vector<4x8x8xf32> -> vector<4x8x8xf32>
    %44 = vector.shape_cast %43 : vector<4x8x8xf32> to vector<32x8xf32>
    %c0_15 = arith.constant 0 : index
    %c0_16 = arith.constant 0 : index
    %45 = vector.load %arg4[%c0_15, %c0_16] : memref<32x32xf32, #tpu.memory_space<vmem>>, vector<32x32xf32>
    %cst_17 = arith.constant dense<0.000000e+00> : vector<32x8xf32>
    %46 = tpu.matmul %45, %44, %cst_17 {dimension_numbers = #tpu.dot_dimension_numbers<[1], [0], [0], [1], [0, 0, 1, 1], [], []>} : vector<32x32xf32>, vector<32x8xf32>, vector<32x8xf32> -> vector<32x8xf32>
    %c0_18 = arith.constant 0 : index
    %c0_19 = arith.constant 0 : index
    %47 = vector.load %arg5[%c0_18, %c0_19] : memref<32x1xf32, #tpu.memory_space<vmem>>, vector<32x1xf32>
    %48 = vector.broadcast %47 : vector<32x1xf32> to vector<32x8xf32>
    %49 = arith.addf %46, %48 : vector<32x8xf32>
    %50 = tpu.transpose %49, [1, 0] : vector<32x8xf32> -> vector<8x32xf32>
    %51 = arith.addf %1, %50 : vector<8x32xf32>
    %cst_20 = arith.constant dense<0.000000e+00> : vector<8xf32>
    %52 = vector.multi_reduction <add>, %51, %cst_20 [1] : vector<8x32xf32> to vector<8xf32>
    %53 = vector.shape_cast %52 : vector<8xf32> to vector<8x1xf32>
    %cst_21 = arith.constant 3.200000e+01 : f32
    %54 = vector.broadcast %cst_21 : f32 to vector<8x1xf32>
    %55 = arith.divf %53, %54 : vector<8x1xf32>
    %56 = vector.broadcast %55 : vector<8x1xf32> to vector<8x32xf32>
    %57 = arith.subf %51, %56 : vector<8x32xf32>
    %58 = arith.mulf %57, %57 : vector<8x32xf32>
    %cst_22 = arith.constant dense<0.000000e+00> : vector<8xf32>
    %59 = vector.multi_reduction <add>, %58, %cst_22 [1] : vector<8x32xf32> to vector<8xf32>
    %60 = vector.shape_cast %59 : vector<8xf32> to vector<8x1xf32>
    %cst_23 = arith.constant 3.200000e+01 : f32
    %61 = vector.broadcast %cst_23 : f32 to vector<8x1xf32>
    %62 = arith.divf %60, %61 : vector<8x1xf32>
    %63 = vector.broadcast %55 : vector<8x1xf32> to vector<8x32xf32>
    %64 = arith.subf %51, %63 : vector<8x32xf32>
    %cst_24 = arith.constant 9.99999974E-6 : f32
    %65 = vector.broadcast %cst_24 : f32 to vector<8x1xf32>
    %66 = arith.addf %62, %65 : vector<8x1xf32>
    %67 = math.rsqrt %66 : vector<8x1xf32>
    %68 = vector.broadcast %67 : vector<8x1xf32> to vector<8x32xf32>
    %69 = arith.mulf %64, %68 : vector<8x32xf32>
    %c0_25 = arith.constant 0 : index
    %c0_26 = arith.constant 0 : index
    %70 = vector.load %arg6[%c0_25, %c0_26] : memref<32x128xf32, #tpu.memory_space<vmem>>, vector<32x128xf32>
    %cst_27 = arith.constant dense<0.000000e+00> : vector<8x128xf32>
    %71 = tpu.matmul %69, %70, %cst_27 {dimension_numbers = #tpu.dot_dimension_numbers<[1], [0], [0], [1], [0, 0, 1, 1], [], []>} : vector<8x32xf32>, vector<32x128xf32>, vector<8x128xf32> -> vector<8x128xf32>
    %c0_28 = arith.constant 0 : index
    %c0_29 = arith.constant 0 : index
    %72 = vector.load %arg7[%c0_28, %c0_29] : memref<1x128xf32, #tpu.memory_space<vmem>>, vector<1x128xf32>
    %73 = vector.broadcast %72 : vector<1x128xf32> to vector<8x128xf32>
    %74 = arith.addf %71, %73 : vector<8x128xf32>
    %cst_30 = arith.constant 0.000000e+00 : f32
    %75 = vector.broadcast %cst_30 : f32 to vector<8x128xf32>
    %76 = arith.maximumf %74, %75 : vector<8x128xf32>
    %c0_31 = arith.constant 0 : index
    %c0_32 = arith.constant 0 : index
    %77 = vector.load %arg8[%c0_31, %c0_32] : memref<128x32xf32, #tpu.memory_space<vmem>>, vector<128x32xf32>
    %cst_33 = arith.constant dense<0.000000e+00> : vector<8x32xf32>
    %78 = tpu.matmul %76, %77, %cst_33 {dimension_numbers = #tpu.dot_dimension_numbers<[1], [0], [0], [1], [0, 0, 1, 1], [], []>} : vector<8x128xf32>, vector<128x32xf32>, vector<8x32xf32> -> vector<8x32xf32>
    %c0_34 = arith.constant 0 : index
    %c0_35 = arith.constant 0 : index
    %79 = vector.load %arg9[%c0_34, %c0_35] : memref<1x32xf32, #tpu.memory_space<vmem>>, vector<1x32xf32>
    %80 = vector.broadcast %79 : vector<1x32xf32> to vector<8x32xf32>
    %81 = arith.addf %78, %80 : vector<8x32xf32>
    %82 = arith.addf %51, %81 : vector<8x32xf32>
    %c0_36 = arith.constant 0 : index
    %c0_37 = arith.constant 0 : index
    %c0_38 = arith.constant 0 : index
    %83 = vector.load %arg10[%c0_36, %c0_37, %c0_38] : memref<1x8x32xf32, #tpu.memory_space<vmem>>, vector<1x8x32xf32>
    %84 = vector.shape_cast %83 : vector<1x8x32xf32> to vector<8x32xf32>
    %85 = vector.shape_cast %82 : vector<8x32xf32> to vector<1x8x32xf32>
    tpu.vector_store %arg10[%c0_36, %c0_37, %c0_38], %85 {strides = array<i32>} : memref<1x8x32xf32, #tpu.memory_space<vmem>>, vector<1x8x32xf32>,
    return
  }
  func.func @transform_0(%arg0: i32) -> (i32, i32, i32) {
    %c0_i32 = arith.constant 0 : i32
    %c0_i32_0 = arith.constant 0 : i32
    %c0_i32_1 = arith.constant 0 : i32
    return %arg0, %c0_i32, %c0_i32_0 : i32, i32, i32
  }
  func.func @transform_1(%arg0: i32) -> (i32, i32) {
    %c0_i32 = arith.constant 0 : i32
    %c0_i32_0 = arith.constant 0 : i32
    %c0_i32_1 = arith.constant 0 : i32
    return %c0_i32, %c0_i32_0 : i32, i32
  }
  func.func @transform_2(%arg0: i32) -> (i32, i32) {
    %c0_i32 = arith.constant 0 : i32
    %c0_i32_0 = arith.constant 0 : i32
    %c0_i32_1 = arith.constant 0 : i32
    return %c0_i32, %c0_i32_0 : i32, i32
  }
  func.func @transform_3(%arg0: i32) -> (i32, i32) {
    %c0_i32 = arith.constant 0 : i32
    %c0_i32_0 = arith.constant 0 : i32
    %c0_i32_1 = arith.constant 0 : i32
    return %c0_i32, %c0_i32_0 : i32, i32
  }
  func.func @transform_4(%arg0: i32) -> (i32, i32) {
    %c0_i32 = arith.constant 0 : i32
    %c0_i32_0 = arith.constant 0 : i32
    %c0_i32_1 = arith.constant 0 : i32
    return %c0_i32, %c0_i32_0 : i32, i32
  }
  func.func @transform_5(%arg0: i32) -> (i32, i32) {
    %c0_i32 = arith.constant 0 : i32
    %c0_i32_0 = arith.constant 0 : i32
    %c0_i32_1 = arith.constant 0 : i32
    return %c0_i32, %c0_i32_0 : i32, i32
  }
  func.func @transform_6(%arg0: i32) -> (i32, i32) {
    %c0_i32 = arith.constant 0 : i32
    %c0_i32_0 = arith.constant 0 : i32
    %c0_i32_1 = arith.constant 0 : i32
    return %c0_i32, %c0_i32_0 : i32, i32
  }
  func.func @transform_7(%arg0: i32) -> (i32, i32) {
    %c0_i32 = arith.constant 0 : i32
    %c0_i32_0 = arith.constant 0 : i32
    %c0_i32_1 = arith.constant 0 : i32
    return %c0_i32, %c0_i32_0 : i32, i32
  }
  func.func @transform_8(%arg0: i32) -> (i32, i32) {
    %c0_i32 = arith.constant 0 : i32
    %c0_i32_0 = arith.constant 0 : i32
    %c0_i32_1 = arith.constant 0 : i32
    return %c0_i32, %c0_i32_0 : i32, i32
  }
  func.func @transform_9(%arg0: i32) -> (i32, i32, i32) {
    %c0_i32 = arith.constant 0 : i32
    %c0_i32_0 = arith.constant 0 : i32
    %c0_i32_1 = arith.constant 0 : i32
    return %arg0, %c0_i32, %c0_i32_0 : i32, i32, i32
  }
}

</mosaic_0001>

<bundles_post_ra>
// kernel: tpu_custom_call.1
= control target key start
LH: loop header
LB: loop body
LE: loop exit
PB: predicated region body
PF: predicated region fallthrough
CT: control target
= control target key end

     0   :  { %14 = vsyncpa [#allocation3], 0  ;;  %s1786_s0 = inlined_call_operand.vmem [shape: f32[2,8,32], index: 0, kind: input, shape index: {}]   ;;  %s1787_s1 = inlined_call_operand.vmem [shape: f32[96,32], index: 1, kind: input, shape index: {}]   ;;  %s1788_s2 = inlined_call_operand.vmem [shape: f32[96,1], index: 2, kind: input, shape index: {}]   ;;  %s1789_s3 = inlined_call_operand.vmem [shape: f32[32,32], index: 3, kind: input, shape index: {}]   ;;  %s1790_s4 = inlined_call_operand.vmem [shape: f32[32,1], index: 4, kind: input, shape index: {}]   ;;  %s1791_s5 = inlined_call_operand.vmem [shape: f32[32,128], index: 5, kind: input, shape index: {}]   ;;  %s1792_s6 = inlined_call_operand.vmem [shape: f32[1,128], index: 6, kind: input, shape index: {}]   ;;  %s1793_s7 = inlined_call_operand.vmem [shape: f32[128,32], index: 7, kind: input, shape index: {}]   ;;  %s1794_s8 = inlined_call_operand.vmem [shape: f32[1,32], index: 8, kind: input, shape index: {}]   ;;  %s1795_s9 = inlined_call_operand.hbm [shape: f32[2,8,32], index: 9, kind: output, shape index: {}]  }
   0x1   :  { %16 = vsyncpa [#allocation3 + $0x1], 0  ;;  %s1455_s30 = smov 0   ;;  %s1457_s10 = smov 0  }
   0x2   :  { %s1459_s11 = smov 0   ;;  %s1461_s12 = smov 0  }
   0x3 LB: > { %s1476_s13 = sadd.s32 4294967295, %s1401_s12   ;;  %s1229_s14 = sadd.s32 4294967294, %s1401_s12   ;;  %s1401_s12 = sphi %s1461_s12, %s1801_s12   ;;  %s1397_s11 = sphi %s1459_s11, %s1800_s11   ;;  %s1393_s10 = sphi %s1457_s10, %s1799_s10   ;;  %s1389_s30 = sphi %s1455_s30, %s1798_s30  }
   0x4   : > { %s1480_s15 = sadd.s32 1, %s1401_s12   ;;  %s223_s16 = sadd.s32 1, %s1397_s11 }
   0x5   : > { %s220_s17 = ssub.s32 %s1401_s12, %s1480_s15  ;;  %p233_p0 = scmp.ne.s32.totalorder %s1397_s11, %s1393_s10 }
   0x6   : > { %p221_p1 = scmp.eq.s32.totalorder %s220_s17, 0  ;;  %p234_p2 = scmp.eq.s32.totalorder %s1476_s13, 1 }
   0x7   : > { %p239_p3 = scmp.ne.s32.totalorder %s1393_s10, %s1389_s30  ;;  %p240_p4 = scmp.eq.s32.totalorder %s1229_s14, 1 }
   0x8   : > { %s1491_s18 = scalar_select %p221_p1, %s1397_s11, %s223_s16  }
   0x9   : > { %p1493_p5 = por %p234_p2, %p233_p0  ;;  %p1497_p6 = por %p240_p4, %p239_p3 }
   0xa   : > { %p1232_p7 = scmp.ge.s32.totalorder %s1401_s12, 1  ;;  %p289_p8 = scmp.lt.s32.totalorder %s1401_s12, 3 }
   0xc   : > { %p290_p9 = pnand %p1232_p7, %p289_p8 }
   0xd   : > { %p324_p10 = scmp.lt.s32.totalorder (!%p290_p9), %s1476_s13, 1  ;;  %s321_s24 = sand.u32 (!%p290_p9), 1, %s1393_s10  }
   0xe   : > { %293 = sbr.rel (%p290_p9) target bundleno = 1990 (0x7c6), region = 56  ;;  %s1266_s26 = sshll.u32 (!%p290_p9), %s1476_s13, 3 }
   0xf   : > { %s1165_s16 = scalar_lea.hbm (!%p290_p9), %s1795_s9, %s1266_s26 }
  0x13   : > { %s325_s21 = scalar_select %p324_p10, %s1476_s13, 1  ;;  %vm329_vm0 = vcmask 261120   ;;  %v1403_v2 = vmov 32.0   ;;  %v371_v17 = vld [vmem:[%s1788_s2] sm:$0xff]  ;;  %v1404_v18 = vmov 0   ;;  %v372_v21 = vld [vmem:[%s1788_s2 + $0x8] sm:$0xff] }
  0x14   : > { %1317 = vrcp.f32 %v1403_v2  ;;  %1312 = vset.pattern.permute.xlu1 %v1404_v18  ;;  %1313 = vset.pattern.permute.xlu2 %v1404_v18  ;;  %v376_v26 = vld [vmem:[%s1788_s2 + $0x28] sm:$0xff]  ;;  %v359_v29 = vld [vmem:[%s1787_s1] sm:$0xff]  ;;  %v377_v30 = vld [vmem:[%s1788_s2 + $0x30] sm:$0xff]  ;;  %vm663_vm5 = vcmask 64512   ;;  %s1155_s13 = scalar_lea.sflag [#allocation3], %s321_s24 }
  0x15   : > { %s1234_s22 = sshll.u32 %s325_s21, 3  ;;  %385 = vperm.xlu1 %1312, %v371_v17   ;;  %1314 = vset.pattern.permute.xlu0 %v1404_v18  ;;  %v360_v31 = vld [vmem:[%s1787_s1 + $0x8] sm:$0xff]  ;;  %v374_v32 = vld [vmem:[%s1788_s2 + $0x18] sm:$0xff]  ;;  %v361_v33 = vld [vmem:[%s1787_s1 + $0x10] sm:$0xff] }
  0x16   : > { %s327_s25 = scalar_lea.vmem %s1786_s0, %s1234_s22  ;;  %400 = vperm.xlu2 %1313, %v374_v32   ;;  %v373_v34 = vld [vmem:[%s1788_s2 + $0x10] sm:$0xff]  ;;  %v362_v35 = vld [vmem:[%s1787_s1 + $0x18] sm:$0xff]  ;;  %v375_v37 = vld [vmem:[%s1788_s2 + $0x20] sm:$0xff]  ;;  %s1169_s22 = sshll.u32 %s1165_s16, 4  ;;  %s1170_s22 = int_to_ptr.hbm [resolvable:$true] %s1169_s22 }
  0x17   : > { %v1508_v0 = vld [vmem:[%s327_s25] sm:$0xff]  ;;  %v378_v36 = vld [vmem:[%s1788_s2 + $0x38] sm:$0xff]  ;;  %v364_v39 = vld [vmem:[%s1787_s1 + $0x28] sm:$0xff]  ;;  %s1233_s25 = sshll.u32 %s321_s24, 3  ;;  %s1353_s23 = sshra.s32 %s1170_s22, 4  ;;  %s1354_s23 = int_to_ptr.hbm [resolvable:$true] %s1353_s23 }
  0x18   : > { %v330_v1 = vsel %vm329_vm0, %v1508_v0, 0.0  ;;  %v363_v38 = vld [vmem:[%s1787_s1 + $0x20] sm:$0xff]  ;;  %v365_v40 = vld [vmem:[%s1787_s1 + $0x30] sm:$0xff]  ;;  %v366_v41 = vld [vmem:[%s1787_s1 + $0x38] sm:$0xff]  ;;  %s323_s17 = scalar_lea.vmem [#allocation2], %s1233_s25  ;;  %s1355_s27 = scalar_lea.hbm %s1354_s23, 8 }
  0x19   : > { %331 = vadd.xlane.f32.xlu0 %v330_v1  ;;  %v367_v54 = vld [vmem:[%s1787_s1 + $0x40] sm:$0xff]  ;;  %v368_v56 = vld [vmem:[%s1787_s1 + $0x48] sm:$0xff]  ;;  %v369_v60 = vld [vmem:[%s1787_s1 + $0x50] sm:$0xff]  ;;  %s1167_s21 = sshll.u32 %s323_s17, 4  ;;  %p1356_p11 = scmp.ne.s32.totalorder %s1354_s23, %s1355_s27  ;;  %s1168_s21 = int_to_ptr.vmem [resolvable:$true] %s1167_s21 }
  0x1a   : > { %v1318_v3 = vpop.eup %1317  ;;  %v370_v63 = vld [vmem:[%s1787_s1 + $0x58] sm:$0xff]  ;;  %s1359_s25 = scalar_lea.hbm %s1795_s9, 16  ;;  %p1360_p0 = scmp.lt.s32.totalorder %s1354_s23, %s1795_s9 }
  0x1b   : > { %v334_v4 = vmul.f32 32.0, %v1318_v3  ;;  %vm338_vm1 = vweird.f32 %v1318_v3  ;;  %p1357_p12 = pnand %p1356_p11, %p1493_p5  ;;  %p1361_p1 = scmp.lt.s32.totalorder %s1359_s25, %s1355_s27 }
  0x1d   : > { %v335_v5 = vsub.f32 1.0, %v334_v4  ;;  %390 = vperm.xlu1 %1312, %v372_v21   ;;  %p1358_p13 = pneg %p1357_p12  ;;  %p1362_p2 = por %p1361_p1, %p1360_p0 }
  0x1e   : > { %395 = vperm.xlu2 %1313, %v373_v34  }
  0x1f   : > { %v336_v6 = vmul.f32 %v1318_v3, %v335_v5  ;;  %p1363_p3 = pnand %p1362_p2, %p1358_p13 }
  0x21   : > { %v337_v7 = vadd.f32 %v1318_v3, %v336_v6 }
  0x23   : > { %v1512_v8 = vsel %vm338_vm1, %v1318_v3, %v337_v7 }
  0x25   : > { %410 = vperm.xlu1 %1312, %v376_v26   ;;  %v962_v26 = vld [vmem:[%s1790_s4 + $0x10] sm:$0xff] }
  0x26   : > { %420 = vperm.xlu2 %1313, %v378_v36  }
  0x2d   : > { %415 = vperm.xlu1 %1312, %v377_v30  }
  0x70   : > { %v401_v45 = vpop.permute.xlu2 %400 }
  0x78   : > { %v396_v49 = vpop.permute.xlu2 %395 }
  0x80   : > { %v421_v4 = vpop.permute.xlu2 %420 }
  0x87   : > { %v386_v42 = vpop.permute.xlu1 %385 }
  0x8c   : > { %v332_v9 = vpop.xlane.xlu0 %331 }
  0x8d   : > { %v340_v10 = vmul.f32 %v1512_v8, %v332_v9 }
  0x8f   : > { %v341_v11 = vsub.f32 %v1508_v0, %v340_v10  ;;  %v391_v46 = vpop.permute.xlu1 %390 }
  0x91   : > { %v342_v12 = vmul.f32 %v341_v11, %v341_v11 }
  0x93   : > { %v343_v13 = vsel %vm329_vm0, %v342_v12, 0.0 }
  0x94   : > { %344 = vadd.xlane.f32.xlu0 %v343_v13 }
  0x97   : > { %v411_v59 = vpop.permute.xlu1 %410 }
  0x9f   : > { %v416_v1 = vpop.permute.xlu1 %415 }
  0xa8   : > { %405 = vperm.xlu0 %1314, %v375_v37  }
 0x107   : > { %v345_v14 = vpop.xlane.xlu0 %344 }
 0x108   : > { %v346_v15 = vmul.f32 %v345_v14, %v1512_v8 }
 0x10a   : > { %v347_v16 = vadd.f32 1e-05, %v346_v15 }
 0x10c   : > { %1319 = vrsqrt.f32 %v347_v16  ;;  %vm354_vm3 = vweird.f32 %v347_v16 }
 0x112   : > { %v1320_v19 = vpop.eup %1319 }
 0x113   : > { %v349_v20 = vmul.f32 %v1320_v19, %v347_v16  ;;  %vm355_vm2 = vweird.f32 %v1320_v19 }
 0x114   : > { %vm356_vm4 = vmor %vm354_vm3, %vm355_vm2 }
 0x115   : > { %v350_v22 = vmul.f32 %v1320_v19, %v349_v20 }
 0x117   : > { %v351_v23 = vmul.f32 0.5, %v350_v22 }
 0x119   : > { %v352_v24 = vsub.f32 1.5, %v351_v23 }
 0x11a   : > { %v406_v55 = vpop.permute.xlu0 %405 }
 0x11b   : > { %v353_v25 = vmul.f32 %v1320_v19, %v352_v24  ;;  %v382_v24 = vld [vmem:[%s1788_s2 + $0x58] sm:$0xff] }
 0x11d   : > { %v357_v27 = vsel %vm356_vm4, %v1320_v19, %v353_v25  ;;  %v381_v25 = vld [vmem:[%s1788_s2 + $0x50] sm:$0xff] }
 0x11e   : > { %v358_v28 = vmul.f32 %v357_v27, %v341_v11 }
 0x120   : > { %1235 = vmatpush.xpose.msk.msra.mxu0 %vm329_vm0, %v358_v28  ;;  %1269 = vmatpush.xpose.msk.msra.mxu1 %vm329_vm0, %v358_v28 }
 0x123   : > { %1236 = vmatmul.msk.f32.vlgmr.msra.gmra.mxu0 %vm329_vm0, %v359_v29  ;;  %1244 = vmatmul.msk.f32.vlgmr.msra.gmra.mxu1 %vm329_vm0, %v367_v54 }
 0x12b   : > { %1237 = vmatmul.msk.f32.gmra.mxu0 %vm329_vm0, %v360_v31  ;;  %1245 = vmatmul.msk.f32.gmra.mxu1 %vm329_vm0, %v368_v56 }
 0x133   : > { %1238 = vmatmul.msk.f32.gmra.mxu0 %vm329_vm0, %v361_v33  ;;  %1246 = vmatmul.msk.f32.gmra.mxu1 %vm329_vm0, %v369_v60 }
 0x13b   : > { %1239 = vmatmul.msk.f32.gmra.mxu0 %vm329_vm0, %v362_v35  ;;  %1247 = vmatmul.msk.f32.gmra.mxu1 %vm329_vm0, %v370_v63 }
 0x143   : > { %1240 = vmatmul.msk.f32.gmra.mxu0 %vm329_vm0, %v363_v38 }
 0x14b   : > { %1241 = vmatmul.msk.f32.gmra.mxu0 %vm329_vm0, %v364_v39 }
 0x153   : > { %1242 = vmatmul.msk.f32.gmra.mxu0 %vm329_vm0, %v365_v40 }
 0x15b   : > { %1243 = vmatmul.msk.f32.gmra.mxu0 %vm329_vm0, %v366_v41 }
 0x1a0   : > { %v499_v43 = vpop.f32.mrf.mxu0  ;;  %v1596_v12 = vpop.f32.mrf.mxu1 }
 0x1a1   : > { %v500_v44 = vadd.f32 %v499_v43, %v386_v42 }
 0x1a3   : > { %535 = vxpose.xlu2.b32.start.end [1/1] (short) (narrow) %v500_v44, 8 }
 0x1a8   : > { %v502_v47 = vpop.f32.mrf.mxu0  ;;  %v1598_v13 = vpop.f32.mrf.mxu1 }
 0x1a9   : > { %v503_v48 = vadd.f32 %v502_v47, %v391_v46 }
 0x1ab   : > { %567 = vxpose.xlu1.b32.start.end [1/1] (short) (narrow) %v503_v48, 8  ;;  %v960_v48 = vld [vmem:[%s1790_s4] sm:$0xff] }
 0x1b0   : > { %v505_v50 = vpop.f32.mrf.mxu0  ;;  %v1600_v14 = vpop.f32.mrf.mxu1 }
 0x1b1   : > { %v506_v51 = vadd.f32 %v505_v50, %v396_v49  ;;  %v963_v49 = vld [vmem:[%s1790_s4 + $0x18] sm:$0xff]  ;;  %v380_v50 = vld [vmem:[%s1788_s2 + $0x48] sm:$0xff] }
 0x1b3   : > { %599 = vxpose.xlu2.b32.start.end [1/1] (short) (narrow) %v506_v51, 8  ;;  %v961_v51 = vld [vmem:[%s1790_s4 + $0x8] sm:$0xff] }
 0x1b8   : > { %v508_v52 = vpop.f32.mrf.mxu0  ;;  %v1602_v15 = vpop.f32.mrf.mxu1 }
 0x1b9   : > { %v509_v53 = vadd.f32 %v508_v52, %v401_v45  ;;  %v379_v45 = vld [vmem:[%s1788_s2 + $0x40] sm:$0xff] }
 0x1bb   : > { %631 = vxpose.xlu0.b32.start.end [1/1] (short) (narrow) %v509_v53, 8 }
 0x1c0   : > { %v511_v57 = vpop.f32.mrf.mxu0 }
 0x1c1   : > { %v512_v58 = vadd.f32 %v511_v57, %v406_v55 }
 0x1c3   : > { %682 = vmatpush.msrb.mxu1 %v512_v58 }
 0x1c8   : > { %v514_v61 = vpop.f32.mrf.mxu0 }
 0x1c9   : > { %v515_v62 = vadd.f32 %v514_v61, %v411_v59 }
 0x1cb   : > { %705 = vmatpush.msra.mxu2 %v515_v62 }
 0x1d0   : > { %v517_v2 = vpop.f32.mrf.mxu0 }
 0x1d1   : > { %v518_v3 = vadd.f32 %v517_v2, %v416_v1 }
 0x1d3   : > { %728 = vmatpush.msra.mxu3 %v518_v3 }
 0x1d8   : > { %v520_v5 = vpop.f32.mrf.mxu0 }
 0x1d9   : > { %v521_v6 = vadd.f32 %v520_v5, %v421_v4 }
 0x1db   : > { %751 = vmatpush.msra.mxu1 %v521_v6 }
 0x23c   : > { %v551_v7 = vpop.trf.xlu2 }
 0x23d   : > { %1248 = vmatmul.msk.f32.vlgmr.msrb.gmra.mxu1 %vm663_vm5, %v551_v7 }
 0x24c   : > { %v615_v9 = vpop.trf.xlu2 }
 0x24d   : > { %1250 = vmatmul.msk.f32.vlgmr.msra.gmra.mxu3 %vm663_vm5, %v615_v9 }
 0x24f   : > { %v583_v10 = vpop.trf.xlu1 }
 0x250   : > { %1249 = vmatmul.msk.f32.vlgmr.msra.gmra.mxu2 %vm663_vm5, %v583_v10 }
 0x25f   : > { %v647_v11 = vpop.trf.xlu0 }
 0x260   : > { %1251 = vmatmul.msk.f32.vlgmr.msra.gmra.mxu1 %vm663_vm5, %v647_v11 }
 0x2ba   : > { %v684_v16 = vpop.f32.mrf.mxu1 }
 0x2bb   : > { %v756_v17 = vsel %vm663_vm5, %v684_v16, -inf }
 0x2bc   : > { %757 = vmax.xlane.f32.xlu2 %v756_v17 }
 0x2d0   : > { %v730_v22 = vpop.f32.mrf.mxu3 }
 0x2d1   : > { %v762_v23 = vsel %vm663_vm5, %v730_v22, -inf }
 0x2d3   : > { %v707_v18 = vpop.f32.mrf.mxu2 }
 0x2d4   : > { %v759_v19 = vsel %vm663_vm5, %v707_v18, -inf }
 0x2d5   : > { %760 = vmax.xlane.f32.xlu0 %v759_v19 }
 0x2dd   : > { %v753_v20 = vpop.f32.mrf.mxu1 }
 0x2de   : > { %v765_v21 = vsel %vm663_vm5, %v753_v20, -inf }
 0x2df   : > { %766 = vmax.xlane.f32.xlu1 %v765_v21 }
 0x2e7   : > { %763 = vmax.xlane.f32.xlu1 %v762_v23 }
 0x2e9   : > { %440 = vperm.xlu0 %1314, %v382_v24  }
 0x2f1   : > { %435 = vperm.xlu0 %1314, %v381_v25  }
 0x2f9   : > { %976 = vperm.xlu0 %1314, %v962_v26  }
 0x32f   : > { %v758_v27 = vpop.xlane.xlu2 %757 }
 0x330   : > { %v768_v28 = vsub.f32 %v684_v16, %v758_v27 }
 0x332   : > { %v772_v29 = vmul.f32 1.442695, %v768_v28 }
 0x334   : > { %1321 = vpow2.f32 %v772_v29 }
 0x33a   : > { %v1322_v30 = vpop.eup %1321 }
 0x33b   : > { %v780_v31 = vsel %vm663_vm5, %v1322_v30, 0.0 }
 0x33c   : > { %781 = vadd.xlane.f32.xlu2 %v780_v31 }
 0x348   : > { %v761_v32 = vpop.xlane.xlu0 %760 }
 0x349   : > { %v769_v33 = vsub.f32 %v707_v18, %v761_v32 }
 0x34b   : > { %v774_v34 = vmul.f32 1.442695, %v769_v33 }
 0x34d   : > { %1323 = vpow2.f32 %v774_v34 }
 0x352   : > { %v767_v35 = vpop.xlane.xlu1 %766 }
 0x353   : > { %v1618_v36 = vpop.eup %1323  ;;  %v771_v40 = vsub.f32 %v753_v20, %v767_v35 }
 0x354   : > { %v783_v37 = vsel %vm663_vm5, %v1618_v36, 0.0 }
 0x355   : > { %784 = vadd.xlane.f32.xlu2 %v783_v37  ;;  %v778_v42 = vmul.f32 1.442695, %v771_v40 }
 0x35a   : > { %v764_v38 = vpop.xlane.xlu1 %763 }
 0x35b   : > { %v770_v39 = vsub.f32 %v730_v22, %v764_v38  ;;  %v441_v21 = vpop.permute.xlu0 %440 }
 0x35d   : > { %v776_v41 = vmul.f32 1.442695, %v770_v39 }
 0x35f   : > { %1325 = vpow2.f32 %v776_v41 }
 0x360   : > { %1327 = vpow2.f32 %v778_v42 }
 0x363   : > { %v436_v34 = vpop.permute.xlu0 %435 }
 0x364   : > { %v530_v40 = vadd.f32 %v1600_v14, %v436_v34 }
 0x365   : > { %v1622_v43 = vpop.eup %1325 }
 0x366   : > { %v786_v44 = vsel %vm663_vm5, %v1622_v43, 0.0  ;;  %v1629_v46 = vpop.eup %1327 }
 0x367   : > { %787 = vadd.xlane.f32.xlu1 %v786_v44  ;;  %v789_v47 = vsel %vm663_vm5, %v1629_v46, 0.0 }
 0x36d   : > { %425 = vperm.xlu2 %1313, %v379_v45  }
 0x36f   : > { %790 = vadd.xlane.f32.xlu1 %v789_v47 }
 0x375   : > { %966 = vperm.xlu2 %1313, %v960_v48  }
 0x37d   : > { %981 = vperm.xlu2 %1313, %v963_v49  }
 0x388   : > { %430 = vperm.xlu1 %1312, %v380_v50  }
 0x390   : > { %971 = vperm.xlu1 %1312, %v961_v51  }
 0x3af   : > { %v782_v52 = vpop.xlane.xlu2 %781 }
 0x3b0   : > { %1329 = vrcp.f32 %v782_v52  ;;  %v803_v56 = vand.u32 2147483648, %v782_v52  ;;  %v801_v58 = vand.u32 2147483647, %v782_v52  ;;  %vm797_vm7 = vweird.f32 %v782_v52 }
 0x3b2   : > { %v804_v60 = vor.u32 1.1754944e-38, %v803_v56  ;;  %vm802_vm9 = vcmp.eq.f32.partialorder %v801_v58, 8.507059e+37 }
 0x3b6   : > { %v1330_v53 = vpop.eup %1329 }
 0x3b7   : > { %v793_v54 = vmul.f32 %v1330_v53, %v782_v52  ;;  %vm798_vm6 = vweird.f32 %v1330_v53 }
 0x3b8   : > { %vm799_vm8 = vmor %vm797_vm7, %vm798_vm6 }
 0x3b9   : > { %v794_v55 = vsub.f32 1.0, %v793_v54 }
 0x3bb   : > { %v795_v57 = vmul.f32 %v1330_v53, %v794_v55 }
 0x3bd   : > { %v796_v59 = vadd.f32 %v1330_v53, %v795_v57 }
 0x3bf   : > { %v800_v61 = vsel %vm799_vm8, %v1330_v53, %v796_v59  ;;  %v959_v53 = vld [vmem:[%s1789_s3 + $0x18] sm:$0xff] }
 0x3c0   : > { %v805_v62 = vsel %vm802_vm9, %v804_v60, %v800_v61  ;;  %v977_v60 = vpop.permute.xlu0 %976 }
 0x3c1   : > { %v806_v63 = vmul.f32 %v1322_v30, %v805_v62 }
 0x3c3   : > { %1252 = vmatpush.xpose.msk.msrb.mxu2 %vm663_vm5, %v806_v63 }
 0x3c8   : > { %v785_v1 = vpop.xlane.xlu2 %784 }
 0x3c9   : > { %1331 = vrcp.f32 %v785_v1  ;;  %v818_v7 = vand.u32 2147483648, %v785_v1  ;;  %v816_v10 = vand.u32 2147483647, %v785_v1  ;;  %vm812_vm11 = vweird.f32 %v785_v1 }
 0x3cb   : > { %v819_v16 = vor.u32 1.1754944e-38, %v818_v7  ;;  %vm817_vm13 = vcmp.eq.f32.partialorder %v816_v10, 8.507059e+37 }
 0x3cf   : > { %v1332_v2 = vpop.eup %1331 }
 0x3d0   : > { %v808_v3 = vmul.f32 %v1332_v2, %v785_v1  ;;  %v426_v4 = vpop.permute.xlu2 %425  ;;  %vm813_vm10 = vweird.f32 %v1332_v2 }
 0x3d1   : > { %v524_v5 = vadd.f32 %v1596_v12, %v426_v4  ;;  %vm814_vm12 = vmor %vm812_vm11, %vm813_vm10 }
 0x3d2   : > { %v809_v6 = vsub.f32 1.0, %v808_v3 }
 0x3d3   : > { %1253 = vmatmul.msk.f32.vlgmr.msrb.gmra.mxu2 %vm663_vm5, %v524_v5 }
 0x3d4   : > { %v810_v9 = vmul.f32 %v1332_v2, %v809_v6 }
 0x3d6   : > { %v811_v11 = vadd.f32 %v1332_v2, %v810_v9 }
 0x3d8   : > { %v815_v17 = vsel %vm814_vm12, %v1332_v2, %v811_v11  ;;  %v967_v54 = vpop.permute.xlu2 %966 }
 0x3d9   : > { %v820_v18 = vsel %vm817_vm13, %v819_v16, %v815_v17  ;;  %v1083_v16 = vld [vmem:[%s1791_s5 + $0x18] sm:$0xff]  ;;  %v1081_v17 = vld [vmem:[%s1791_s5 + $0x8] sm:$0xff] }
 0x3da   : > { %v788_v19 = vpop.xlane.xlu1 %787  ;;  %v821_v20 = vmul.f32 %v1618_v36, %v820_v18  ;;  %v1080_v18 = vld [vmem:[%s1791_s5] sm:$0xff] }
 0x3db   : > { %1333 = vrcp.f32 %v788_v19  ;;  %v833_v25 = vand.u32 2147483648, %v788_v19  ;;  %v831_v27 = vand.u32 2147483647, %v788_v19  ;;  %vm827_vm15 = vweird.f32 %v788_v19 }
 0x3dc   : > { %1254 = vmatpush.xpose.msk.msrb.mxu3 %vm663_vm5, %v821_v20  ;;  %v1126_v20 = vld [vmem:[%s1793_s7 + $0x70] sm:$0xff] }
 0x3dd   : > { %v834_v30 = vor.u32 1.1754944e-38, %v833_v25  ;;  %vm832_vm2 = vcmp.eq.f32.partialorder %v831_v27, 8.507059e+37  ;;  %v1122_v25 = vld [vmem:[%s1793_s7 + $0x50] sm:$0xff]  ;;  %v1121_v27 = vld [vmem:[%s1793_s7 + $0x48] sm:$0xff] }
 0x3e0   : > { %v982_v63 = vpop.permute.xlu2 %981 }
 0x3e1   : > { %v1334_v12 = vpop.eup %1333 }
 0x3e2   : > { %v823_v22 = vmul.f32 %v1334_v12, %v788_v19  ;;  %v791_v23 = vpop.xlane.xlu1 %790  ;;  %vm828_vm14 = vweird.f32 %v1334_v12  ;;  %v1127_v19 = vld [vmem:[%s1793_s7 + $0x78] sm:$0xff] }
 0x3e3   : > { %1335 = vrcp.f32 %v791_v23  ;;  %vm829_vm1 = vmor %vm827_vm15, %vm828_vm14  ;;  %v848_v37 = vand.u32 2147483648, %v791_v23  ;;  %v846_v39 = vand.u32 2147483647, %v791_v23  ;;  %vm842_vm4 = vweird.f32 %v791_v23 }
 0x3e4   : > { %v824_v24 = vsub.f32 1.0, %v823_v22  ;;  %v1123_v22 = vld [vmem:[%s1793_s7 + $0x58] sm:$0xff] }
 0x3e5   : > { %v849_v42 = vor.u32 1.1754944e-38, %v848_v37  ;;  %vm847_vm7 = vcmp.eq.f32.partialorder %v846_v39, 8.507059e+37 }
 0x3e6   : > { %v825_v26 = vmul.f32 %v1334_v12, %v824_v24 }
 0x3e8   : > { %v826_v28 = vadd.f32 %v1334_v12, %v825_v26 }
 0x3e9   : > { %v1336_v29 = vpop.eup %1335 }
 0x3ea   : > { %v830_v31 = vsel %vm829_vm1, %v1334_v12, %v826_v28  ;;  %v838_v32 = vmul.f32 %v1336_v29, %v791_v23  ;;  %vm843_vm3 = vweird.f32 %v1336_v29  ;;  %v1125_v12 = vld [vmem:[%s1793_s7 + $0x68] sm:$0xff]  ;;  %v1120_v28 = vld [vmem:[%s1793_s7 + $0x40] sm:$0xff] }
 0x3eb   : > { %v835_v33 = vsel %vm832_vm2, %v834_v30, %v830_v31  ;;  %vm844_vm6 = vmor %vm842_vm4, %vm843_vm3  ;;  %v1117_v31 = vld [vmem:[%s1793_s7 + $0x28] sm:$0xff] }
 0x3ec   : > { %v839_v35 = vsub.f32 1.0, %v838_v32  ;;  %v836_v36 = vmul.f32 %v1622_v43, %v835_v33  ;;  %v533_v43 = vadd.f32 %v1602_v15, %v441_v21  ;;  %v958_v15 = vld [vmem:[%s1789_s3 + $0x10] sm:$0xff]  ;;  %v1124_v21 = vld [vmem:[%s1793_s7 + $0x60] sm:$0xff] }
 0x3ed   : > { %v1116_v33 = vld [vmem:[%s1793_s7 + $0x20] sm:$0xff] }
 0x3ee   : > { %v840_v38 = vmul.f32 %v1336_v29, %v839_v35  ;;  %1256 = vmatpush.xpose.msk.msrb.mxu1 %vm663_vm5, %v836_v36  ;;  %v1115_v35 = vld [vmem:[%s1793_s7 + $0x18] sm:$0xff] }
 0x3f0   : > { %v841_v41 = vadd.f32 %v1336_v29, %v840_v38 }
 0x3f1   : > { %1257 = vmatmul.msk.f32.vlgmr.msrb.gmra.mxu1 %vm663_vm5, %v530_v40 }
 0x3f2   : > { %v845_v44 = vsel %vm844_vm6, %v1336_v29, %v841_v41  ;;  %1103 = vmatpush.msra.mxu1 %v1083_v16  ;;  %v1118_v29 = vld [vmem:[%s1793_s7 + $0x30] sm:$0xff] }
 0x3f3   : > { %v850_v45 = vsel %vm847_vm7, %v849_v42, %v845_v44  ;;  %v1114_v41 = vld [vmem:[%s1793_s7 + $0x10] sm:$0xff]  ;;  %v1113_v42 = vld [vmem:[%s1793_s7 + $0x8] sm:$0xff]  ;;  %v1112_v44 = vld [vmem:[%s1793_s7] sm:$0xff] }
 0x3f4   : > { %v851_v47 = vmul.f32 %v1629_v46, %v850_v45  ;;  %v956_v46 = vld [vmem:[%s1789_s3] sm:$0xff] }
 0x3f5   : > { %v1315_v45 = vld [vmem:[%s1792_s6] ss:$0 sm:$0xff] }
 0x3f6   : > { %1258 = vmatpush.xpose.msk.msra.mxu2 %vm663_vm5, %v851_v47 }
 0x3f9   : > { %1259 = vmatmul.msk.f32.vlgmr.msra.gmra.mxu2 %vm663_vm5, %v533_v43 }
 0x3fa   : > { %v431_v48 = vpop.permute.xlu1 %430  ;;  %1132 = vmatpush.msrb.mxu2 %v1127_v19 }
 0x3fb   : > { %v527_v14 = vadd.f32 %v1598_v13, %v431_v48  ;;  %v957_v13 = vld [vmem:[%s1789_s3 + $0x8] sm:$0xff] }
 0x3fc   : > { %1133 = vmatpush.msrb.mxu2 %v1126_v20 }
 0x3fd   : > { %1255 = vmatmul.msk.f32.vlgmr.msrb.gmra.mxu3 %vm663_vm5, %v527_v14  ;;  %v1316_v14 = vld [vmem:[%s1794_s8] ss:$0 sm:$0xff] }
 0x3fe   : > { %1134 = vmatpush.msrb.mxu2 %v1125_v12 }
 0x400   : > { %1135 = vmatpush.msrb.mxu2 %v1124_v21 }
 0x402   : > { %v972_v57 = vpop.permute.xlu1 %971  ;;  %1136 = vmatpush.msrb.mxu2 %v1123_v22 }
 0x404   : > { %1137 = vmatpush.msrb.mxu2 %v1122_v25 }
 0x406   : > { %1138 = vmatpush.msrb.mxu2 %v1121_v27 }
 0x408   : > { %1139 = vmatpush.msrb.mxu2 %v1120_v28 }
 0x456   : > { %v875_v49 = vpop.f32.mrf.mxu2 }
 0x46e   : > { %v927_v51 = vpop.f32.mrf.mxu1 }
 0x47c   : > { %v953_v50 = vpop.f32.mrf.mxu2 }
 0x47d   : > { %1008 = vmatpush.msra.mxu3 %v953_v50 }
 0x47f   : > { %1009 = vmatpush.msra.mxu3 %v927_v51 }
 0x480   : > { %v901_v52 = vpop.f32.mrf.mxu3 }
 0x481   : > { %1010 = vmatpush.msra.mxu3 %v901_v52 }
 0x483   : > { %1011 = vmatpush.msra.mxu3 %v875_v49 }
 0x484   : > { %1260 = vmatmul.msk.f32.vlgmr.msra.gmra.mxu3 %vm329_vm0, %v956_v46 }
 0x48c   : > { %1261 = vmatmul.msk.f32.gmra.mxu3 %vm329_vm0, %v957_v13 }
 0x494   : > { %1262 = vmatmul.msk.f32.gmra.mxu3 %vm329_vm0, %v958_v15 }
 0x49c   : > { %1263 = vmatmul.msk.f32.gmra.mxu3 %vm329_vm0, %v959_v53 }
 0x507   : > { %v1013_v55 = vpop.f32.mrf.mxu3 }
 0x508   : > { %v1014_v56 = vadd.f32 %v1013_v55, %v967_v54 }
 0x50a   : > { %1025 = vxpose.xlu1.b32.start [1/4] (short) (narrow) %v1014_v56, 8 }
 0x50f   : > { %v1016_v58 = vpop.f32.mrf.mxu3 }
 0x510   : > { %v1017_v59 = vadd.f32 %v1016_v58, %v972_v57 }
 0x512   : > { %1026 = vxpose.xlu1.b32.cont [2/4] (short) (narrow) %v1017_v59, 8 }
 0x517   : > { %v1019_v61 = vpop.f32.mrf.mxu3 }
 0x518   : > { %v1020_v62 = vadd.f32 %v1019_v61, %v977_v60 }
 0x51a   : > { %1027 = vxpose.xlu1.b32.cont [3/4] (short) (narrow) %v1020_v62, 8 }
 0x51f   : > { %v1022_v1 = vpop.f32.mrf.mxu3 }
 0x520   : > { %v1023_v2 = vadd.f32 %v1022_v1, %v982_v63 }
 0x522   : > { %1028 = vxpose.xlu1.b32.end [4/4] (short) (narrow) %v1023_v2, 8 }
 0x5ae   : > { %v1041_v3 = vpop.trf.xlu1 }
 0x5af   : > { %v1677_v4 = vadd.f32 %v1041_v3, %v1508_v0  ;;  %v1082_v0 = vld [vmem:[%s1791_s5 + $0x10] sm:$0xff] }
 0x5b0   : > { %1104 = vmatpush.msra.mxu1 %v1082_v0 }
 0x5b1   : > { %v1058_v5 = vsel %vm329_vm0, %v1677_v4, 0.0 }
 0x5b2   : > { %1059 = vadd.xlane.f32.xlu0 %v1058_v5  ;;  %1105 = vmatpush.msra.mxu1 %v1081_v17 }
 0x5b4   : > { %1106 = vmatpush.msra.mxu1 %v1080_v18 }
 0x625   : > { %v1060_v6 = vpop.xlane.xlu0 %1059 }
 0x626   : > { %v1061_v7 = vmul.f32 %v1060_v6, %v1512_v8 }
 0x628   : > { %v1062_v9 = vsub.f32 %v1677_v4, %v1061_v7 }
 0x62a   : > { %v1063_v10 = vmul.f32 %v1062_v9, %v1062_v9 }
 0x62c   : > { %v1064_v11 = vsel %vm329_vm0, %v1063_v10, 0.0 }
 0x62d   : > { %1065 = vadd.xlane.f32.xlu2 %v1064_v11 }
 0x6a0   : > { %v1066_v23 = vpop.xlane.xlu2 %1065 }
 0x6a1   : > { %v1067_v24 = vmul.f32 %v1066_v23, %v1512_v8  ;;  %v1119_v8 = vld [vmem:[%s1793_s7 + $0x38] sm:$0xff] }
 0x6a2   : > { %1140 = vmatpush.msrb.mxu2 %v1119_v8 }
 0x6a3   : > { %v1068_v26 = vadd.f32 1e-05, %v1067_v24 }
 0x6a4   : > { %1141 = vmatpush.msrb.mxu2 %v1118_v29 }
 0x6a5   : > { %1337 = vrsqrt.f32 %v1068_v26  ;;  %vm1075_vm8 = vweird.f32 %v1068_v26 }
 0x6a6   : > { %1142 = vmatpush.msrb.mxu2 %v1117_v31 }
 0x6a8   : > { %1143 = vmatpush.msrb.mxu2 %v1116_v33 }
 0x6aa   : > { %1144 = vmatpush.msrb.mxu2 %v1115_v35 }
 0x6ab   : > { %v1338_v30 = vpop.eup %1337 }
 0x6ac   : > { %v1070_v32 = vmul.f32 %v1338_v30, %v1068_v26  ;;  %vm1076_vm5 = vweird.f32 %v1338_v30  ;;  %1145 = vmatpush.msrb.mxu2 %v1114_v41 }
 0x6ad   : > { %vm1077_vm9 = vmor %vm1075_vm8, %vm1076_vm5 }
 0x6ae   : > { %v1071_v34 = vmul.f32 %v1338_v30, %v1070_v32  ;;  %1146 = vmatpush.msrb.mxu2 %v1113_v42 }
 0x6b0   : > { %v1072_v36 = vmul.f32 0.5, %v1071_v34  ;;  %1147 = vmatpush.msrb.mxu2 %v1112_v44 }
 0x6b2   : > { %v1073_v37 = vsub.f32 1.5, %v1072_v36 }
 0x6b4   : > { %v1074_v38 = vmul.f32 %v1338_v30, %v1073_v37 }
 0x6b6   : > { %v1078_v39 = vsel %vm1077_vm9, %v1338_v30, %v1074_v38 }
 0x6b7   : > { %v1079_v40 = vmul.f32 %v1078_v39, %v1062_v9 }
 0x6b9   : > { %1264 = vmatmul.msk.f32.vlgmr.msra.gmra.mxu1 %vm329_vm0, %v1079_v40 }
 0x736   : > { %v1108_v47 = vpop.f32.mrf.mxu1 }
 0x737   : > { %v1109_v43 = vadd.f32 %v1315_v45, %v1108_v47 }
 0x739   : > { %v1111_v48 = vmax.f32 %v1109_v43, 0.0 }
 0x73b   : > { %1148 = vmatmul.f32.vlgmr.msrb.gmra.mxu2 %v1111_v48 }
 0x7be   : > { %v1149_v49 = vpop.f32.mrf.mxu2 }
 0x7bf   : > { %v1150_v50 = vadd.f32 %v1316_v14, %v1149_v49 }
 0x7c1   : > { %v1152_v51 = vadd.f32 %v1150_v50, %v1677_v4 }
 0x7c3   : > { %1153 = vst.msk [vmem:[%s323_s17] sm:$0xff] %vm329_vm0, %v1152_v51 }
 0x7c4   : > { %1366 = shalt.err (!%p1363_p3)
}
 0x7c5   : > { %1270 = dma.vmem_to_hbm [thread:$0]  (%p1493_p5), %s1168_s21, 128, %s1170_s22, %s1155_s13  }
 0x7c6 PF: > { %p1276_p4 = scmp.ge.s32.totalorder %s1401_s12, 2  ;;  %s1181_s24 = sand.u32 1, %s1389_s30  }
 0x7c7   : > { %s1182_s16 = scalar_lea.sflag [#allocation3], %s1181_s24 }
 0x7c8   : > { %p1273_p7 = pnand %p1276_p4, %p1497_p6 }
 0x7ca   : > { %p1274_p8 = pneg %p1273_p7 }
 0x7cc   : > { %1384 = dma.done.wait (%p1274_p8), %s1182_s16, 128  }
 0x7cd   : > { %1386 = vsyncadd (%p1274_p8), %s1182_s16, 4294967168  ;;  %p19_p9 = scmp.ge.s32.totalorder %s1480_s15, 4   ;;  %s1798_s30 = smov %s1393_s10 }
 0x7ce   : > { %s1799_s10 = smov %s1397_s11  ;;  %s1800_s11 = smov %s1491_s18 }
 0x7cf   : > { %s1801_s12 = smov %s1480_s15  ;;  %21 = sbr.rel (!%p19_p9) target bundleno = 3 (0x3), region = 91 }
 0x7d4   :  { %1188 = vsyncpa [#allocation3], 1 }
 0x7d5   :  { %1190 = vsyncpa [#allocation3 + $0x1], 1 }

</bundles_post_ra>
